<compile_context>
chip_gen: v6e
topology: v6e:2x2x1
jax: 0.10.0
libtpu: 0.0.40
codegen_flags: <defaults>
</compile_context>

<pallas_src>
import functools

import jax
import jax.numpy as jnp
from jax.experimental import pallas as pl
from jax.experimental.pallas import tpu as pltpu

K_IN = 784       # layer-1 fan-in, kept unpadded (full-dim block)
N_OUT_PAD = 128  # 10 logits padded to one full lane width (unmasked stores)


def _round_up(n, m):
    return ((n + m - 1) // m) * m


def _cdiv(a, b):
    return -(-a // b)


def mlp_kernel(x_ref, w1_ref, b1_ref, w2_ref, b2_ref, w3_ref, b3_ref, o_ref):
    # Whole hot path in VMEM: cast x tile to bf16, then 3 MXU matmuls
    # (bf16 inputs, f32 accumulation) + f32 bias + ReLU.
    x = x_ref[...].astype(jnp.bfloat16)                                # [tb, 784]
    h1 = jnp.dot(x, w1_ref[...], preferred_element_type=jnp.float32) + b1_ref[...]
    h1 = jnp.maximum(h1, 0.0).astype(jnp.bfloat16)                     # [tb, 256]
    h2 = jnp.dot(h1, w2_ref[...], preferred_element_type=jnp.float32) + b2_ref[...]
    h2 = jnp.maximum(h2, 0.0).astype(jnp.bfloat16)                     # [tb, 128]
    out = jnp.dot(h2, w3_ref[...], preferred_element_type=jnp.float32) + b3_ref[...]
    o_ref[...] = out.astype(o_ref.dtype)                               # [tb, 128] bf16


def prepare_params(params):
    """One-time cast/pad of weights & biases (hoisted out of the per-call path)."""
    w1, b1, w2, b2, w3, b3 = params
    w1p = w1.astype(jnp.bfloat16)                                           # [784, 256]
    w2p = w2.astype(jnp.bfloat16)                                           # [256, 128]
    w3p = jnp.pad(w3, ((0, 0), (0, N_OUT_PAD - 10))).astype(jnp.bfloat16)   # [128, 128]
    b1p = b1.reshape(1, -1).astype(jnp.float32)                             # [1, 256]
    b2p = b2.reshape(1, -1).astype(jnp.float32)                             # [1, 128]
    b3p = jnp.pad(b3.reshape(1, -1).astype(jnp.float32),
                  ((0, 0), (0, N_OUT_PAD - 10)))                            # [1, 128]
    return (w1p, b1p, w2p, b2p, w3p, b3p)


@functools.partial(jax.jit, static_argnames=("batch_tile",))
def snn_forward(x, prepared_params, *, batch_tile=1024):
    """x: anything that flattens to [-1, 784] (e.g. [B, 1, 28, 28]); returns [B, 10] f32."""
    assert batch_tile % 16 == 0, "batch_tile must be a multiple of 16 (bf16 sublanes)"
    assert batch_tile <= 4096, "batch_tile > 4096 risks overflowing v7x's 64 MiB VMEM"

    x2d = x.reshape(-1, K_IN).astype(jnp.float32)
    B = x2d.shape[0]

    # Batch tiling:
    #  * pad B only up to a multiple of 16 (bf16 sublane packing of the output),
    #  * pick the number of grid steps so (a) tiles are <= batch_tile and
    #    (b) batches >= 64 rows get >= 2 steps (both v7x TensorCores busy),
    #  * tb is a multiple of 16 and Bp a multiple of tb (waste stays small
    #    because tb is chosen from the actual batch, not a fixed 1024).
    Bp16 = _round_up(B, 16)
    n_steps = max(_cdiv(Bp16, batch_tile), 2 if Bp16 >= 64 else 1)
    tb = _round_up(_cdiv(Bp16, n_steps), 16)
    Bp = _round_up(Bp16, tb)

    # Zero-pad batch rows only (no K padding, no dtype pre-pass in HBM).
    # NOTE: padded rows produce relu(bias)-propagated nonzero logits; they are
    # sliced off below and must never be reduced over by a fused consumer.
    xp = jnp.pad(x2d, ((0, Bp - B), (0, 0)))

    w1p, b1p, w2p, b2p, w3p, b3p = prepared_params

    grid = (Bp // tb,)
    # Weights / biases: block == full array dims, constant index_map -> kept
    # resident in VMEM across grid steps (full-dim blocks exempt from (8,128)).
    full = lambda arr: pl.BlockSpec(arr.shape, lambda i: (0, 0))

    out = pl.pallas_call(
        mlp_kernel,
        out_shape=jax.ShapeDtypeStruct((Bp, N_OUT_PAD), jnp.bfloat16),
        grid_spec=pltpu.PrefetchScalarGridSpec(
            num_scalar_prefetch=0,
            grid=grid,
            in_specs=[
                pl.BlockSpec((tb, K_IN), lambda i: (i, 0)),   # f32 x tile, pipelined
                full(w1p), full(b1p),
                full(w2p), full(b2p),
                full(w3p), full(b3p),
            ],
            out_specs=pl.BlockSpec((tb, N_OUT_PAD), lambda i: (i, 0)),
        ),
        compiler_params=pltpu.CompilerParams(
            dimension_semantics=("parallel",),
            vmem_limit_bytes=32 * 1024 * 1024,
        ),
    )(xp, w1p, b1p, w2p, b2p, w3p, b3p)

    # Drop batch padding + the 118 zero lanes; return f32 to match the module.
    return out[:B, :10].astype(jnp.float32)


def init_params(key):
    """PyTorch-style Linear init: U(-1/sqrt(fan_in), 1/sqrt(fan_in))."""
    def linear(key, fan_in, fan_out):
        kw, kb = jax.random.split(key)
        bound = 1.0 / jnp.sqrt(fan_in)
        w = jax.random.uniform(kw, (fan_in, fan_out), jnp.float32, -bound, bound)
        b = jax.random.uniform(kb, (fan_out,), jnp.float32, -bound, bound)
        return w, b

    k1, k2, k3 = jax.random.split(key, 3)
    w1, b1 = linear(k1, 784, 256)
    w2, b2 = linear(k2, 256, 128)
    w3, b3 = linear(k3, 128, 10)
    return (w1, b1, w2, b2, w3, b3)


def snn_reference_bf16(x, params):
    """Pure-JAX reference matching the kernel's bf16-in / f32-accumulate math."""
    w1, b1, w2, b2, w3, b3 = params
    x = x.reshape(-1, 784).astype(jnp.bfloat16)
    h1 = jnp.dot(x, w1.astype(jnp.bfloat16),
                 preferred_element_type=jnp.float32) + b1
    h1 = jax.nn.relu(h1).astype(jnp.bfloat16)
    h2 = jnp.dot(h1, w2.astype(jnp.bfloat16),
                 preferred_element_type=jnp.float32) + b2
    h2 = jax.nn.relu(h2).astype(jnp.bfloat16)
    return jnp.dot(h2, w3.astype(jnp.bfloat16),
                   preferred_element_type=jnp.float32) + b3


if __name__ == "__main__":
    key = jax.random.PRNGKey(0)
    kx, kp = jax.random.split(key)
    params = init_params(kp)
    prepared = prepare_params(params)

    # MNIST-like input: [batch, 1, 28, 28] -> view(-1, 784) inside forward.
    x = jax.random.normal(kx, (16, 1, 28, 28), jnp.float32)
    out = jax.block_until_ready(snn_forward(x, prepared))
    assert out.shape == (16, 10), out.shape
    ref = snn_reference_bf16(x, params)
    assert jnp.allclose(out, ref, atol=2e-2, rtol=2e-2), \
        float(jnp.max(jnp.abs(out - ref)))

    # Exercise the multi-step grid + batch-padding path (B=100 -> tb=64, grid=(2,)).
    x2 = jax.random.normal(jax.random.PRNGKey(1), (100, 1, 28, 28), jnp.float32)
    out2 = jax.block_until_ready(snn_forward(x2, prepared))
    assert out2.shape == (100, 10), out2.shape
    ref2 = snn_reference_bf16(x2, params)
    assert jnp.allclose(out2, ref2, atol=2e-2, rtol=2e-2), \
        float(jnp.max(jnp.abs(out2 - ref2)))

    print("KERNEL_OK")
</pallas_src>

<mosaic_0001>
module attributes {stable_mosaic.version = 11 : i64} {
  func.func @mlp_kernel(%arg0: i32, %arg1: memref<16x784xf32, #tpu.memory_space<vmem>>, %arg2: memref<784x256xbf16, #tpu.memory_space<vmem>>, %arg3: memref<1x256xf32, #tpu.memory_space<vmem>>, %arg4: memref<256x128xbf16, #tpu.memory_space<vmem>>, %arg5: memref<1x128xf32, #tpu.memory_space<vmem>>, %arg6: memref<128x128xbf16, #tpu.memory_space<vmem>>, %arg7: memref<1x128xf32, #tpu.memory_space<vmem>>, %arg8: memref<16x128xbf16, #tpu.memory_space<vmem>>) attributes {dimension_semantics = [#tpu.dimension_semantics<parallel>], iteration_bounds = array<i64: 1>, scalar_prefetch = 0 : i64, scratch_operands = 0 : i64, tpu.core_type = #tpu.core_type<tc>, window_params = [{transform_indices = @transform_0, window_bounds = array<i64: 16, 784>}, {pipeline_mode = #tpu.pipeline_mode<synchronous>, transform_indices = @transform_1, window_bounds = array<i64: 784, 256>}, {pipeline_mode = #tpu.pipeline_mode<synchronous>, transform_indices = @transform_2, window_bounds = array<i64: 1, 256>}, {pipeline_mode = #tpu.pipeline_mode<synchronous>, transform_indices = @transform_3, window_bounds = array<i64: 256, 128>}, {pipeline_mode = #tpu.pipeline_mode<synchronous>, transform_indices = @transform_4, window_bounds = array<i64: 1, 128>}, {pipeline_mode = #tpu.pipeline_mode<synchronous>, transform_indices = @transform_5, window_bounds = array<i64: 128, 128>}, {pipeline_mode = #tpu.pipeline_mode<synchronous>, transform_indices = @transform_6, window_bounds = array<i64: 1, 128>}, {transform_indices = @transform_7, window_bounds = array<i64: 16, 128>}]} {
    %c0 = arith.constant 0 : index
    %c0_0 = arith.constant 0 : index
    %0 = vector.load %arg1[%c0, %c0_0] : memref<16x784xf32, #tpu.memory_space<vmem>>, vector<16x784xf32>
    %1 = arith.truncf %0 : vector<16x784xf32> to vector<16x784xbf16>
    %c0_1 = arith.constant 0 : index
    %c0_2 = arith.constant 0 : index
    %2 = vector.load %arg2[%c0_1, %c0_2] : memref<784x256xbf16, #tpu.memory_space<vmem>>, vector<784x256xbf16>
    %cst = arith.constant dense<0.000000e+00> : vector<16x256xf32>
    %3 = tpu.matmul %1, %2, %cst {dimension_numbers = #tpu.dot_dimension_numbers<[1], [0], [0], [1], [0, 0, 1, 1], [], []>} : vector<16x784xbf16>, vector<784x256xbf16>, vector<16x256xf32> -> vector<16x256xf32>
    %c0_3 = arith.constant 0 : index
    %c0_4 = arith.constant 0 : index
    %4 = vector.load %arg3[%c0_3, %c0_4] : memref<1x256xf32, #tpu.memory_space<vmem>>, vector<1x256xf32>
    %5 = vector.broadcast %4 : vector<1x256xf32> to vector<16x256xf32>
    %6 = arith.addf %3, %5 : vector<16x256xf32>
    %cst_5 = arith.constant 0.000000e+00 : f32
    %7 = vector.broadcast %cst_5 : f32 to vector<16x256xf32>
    %8 = arith.maximumf %6, %7 : vector<16x256xf32>
    %9 = arith.truncf %8 : vector<16x256xf32> to vector<16x256xbf16>
    %c0_6 = arith.constant 0 : index
    %c0_7 = arith.constant 0 : index
    %10 = vector.load %arg4[%c0_6, %c0_7] : memref<256x128xbf16, #tpu.memory_space<vmem>>, vector<256x128xbf16>
    %cst_8 = arith.constant dense<0.000000e+00> : vector<16x128xf32>
    %11 = tpu.matmul %9, %10, %cst_8 {dimension_numbers = #tpu.dot_dimension_numbers<[1], [0], [0], [1], [0, 0, 1, 1], [], []>} : vector<16x256xbf16>, vector<256x128xbf16>, vector<16x128xf32> -> vector<16x128xf32>
    %c0_9 = arith.constant 0 : index
    %c0_10 = arith.constant 0 : index
    %12 = vector.load %arg5[%c0_9, %c0_10] : memref<1x128xf32, #tpu.memory_space<vmem>>, vector<1x128xf32>
    %13 = vector.broadcast %12 : vector<1x128xf32> to vector<16x128xf32>
    %14 = arith.addf %11, %13 : vector<16x128xf32>
    %cst_11 = arith.constant 0.000000e+00 : f32
    %15 = vector.broadcast %cst_11 : f32 to vector<16x128xf32>
    %16 = arith.maximumf %14, %15 : vector<16x128xf32>
    %17 = arith.truncf %16 : vector<16x128xf32> to vector<16x128xbf16>
    %c0_12 = arith.constant 0 : index
    %c0_13 = arith.constant 0 : index
    %18 = vector.load %arg6[%c0_12, %c0_13] : memref<128x128xbf16, #tpu.memory_space<vmem>>, vector<128x128xbf16>
    %cst_14 = arith.constant dense<0.000000e+00> : vector<16x128xf32>
    %19 = tpu.matmul %17, %18, %cst_14 {dimension_numbers = #tpu.dot_dimension_numbers<[1], [0], [0], [1], [0, 0, 1, 1], [], []>} : vector<16x128xbf16>, vector<128x128xbf16>, vector<16x128xf32> -> vector<16x128xf32>
    %c0_15 = arith.constant 0 : index
    %c0_16 = arith.constant 0 : index
    %20 = vector.load %arg7[%c0_15, %c0_16] : memref<1x128xf32, #tpu.memory_space<vmem>>, vector<1x128xf32>
    %21 = vector.broadcast %20 : vector<1x128xf32> to vector<16x128xf32>
    %22 = arith.addf %19, %21 : vector<16x128xf32>
    %23 = arith.truncf %22 : vector<16x128xf32> to vector<16x128xbf16>
    %c0_17 = arith.constant 0 : index
    %c0_18 = arith.constant 0 : index
    %24 = vector.load %arg8[%c0_17, %c0_18] : memref<16x128xbf16, #tpu.memory_space<vmem>>, vector<16x128xbf16>
    tpu.vector_store %arg8[%c0_17, %c0_18], %23 {strides = array<i32>} : memref<16x128xbf16, #tpu.memory_space<vmem>>, vector<16x128xbf16>,
    return
  }
  func.func @transform_0(%arg0: i32) -> (i32, i32) {
    %c0_i32 = arith.constant 0 : i32
    %c0_i32_0 = arith.constant 0 : i32
    return %arg0, %c0_i32 : i32, i32
  }
  func.func @transform_1(%arg0: i32) -> (i32, i32) {
    %c0_i32 = arith.constant 0 : i32
    %c0_i32_0 = arith.constant 0 : i32
    %c0_i32_1 = arith.constant 0 : i32
    return %c0_i32, %c0_i32_0 : i32, i32
  }
  func.func @transform_2(%arg0: i32) -> (i32, i32) {
    %c0_i32 = arith.constant 0 : i32
    %c0_i32_0 = arith.constant 0 : i32
    %c0_i32_1 = arith.constant 0 : i32
    return %c0_i32, %c0_i32_0 : i32, i32
  }
  func.func @transform_3(%arg0: i32) -> (i32, i32) {
    %c0_i32 = arith.constant 0 : i32
    %c0_i32_0 = arith.constant 0 : i32
    %c0_i32_1 = arith.constant 0 : i32
    return %c0_i32, %c0_i32_0 : i32, i32
  }
  func.func @transform_4(%arg0: i32) -> (i32, i32) {
    %c0_i32 = arith.constant 0 : i32
    %c0_i32_0 = arith.constant 0 : i32
    %c0_i32_1 = arith.constant 0 : i32
    return %c0_i32, %c0_i32_0 : i32, i32
  }
  func.func @transform_5(%arg0: i32) -> (i32, i32) {
    %c0_i32 = arith.constant 0 : i32
    %c0_i32_0 = arith.constant 0 : i32
    %c0_i32_1 = arith.constant 0 : i32
    return %c0_i32, %c0_i32_0 : i32, i32
  }
  func.func @transform_6(%arg0: i32) -> (i32, i32) {
    %c0_i32 = arith.constant 0 : i32
    %c0_i32_0 = arith.constant 0 : i32
    %c0_i32_1 = arith.constant 0 : i32
    return %c0_i32, %c0_i32_0 : i32, i32
  }
  func.func @transform_7(%arg0: i32) -> (i32, i32) {
    %c0_i32 = arith.constant 0 : i32
    %c0_i32_0 = arith.constant 0 : i32
    return %arg0, %c0_i32 : i32, i32
  }
}

</mosaic_0001>

<bundles_post_ra>
// kernel: snn_forward.1
= control target key start
LH: loop header
LB: loop body
LE: loop exit
PB: predicated region body
PF: predicated region fallthrough
CT: control target
= control target key end

     0   :  { %vm648_vm0 = vcmask 130048   ;;  %vm1496_vm1 = vmmov 0   ;;  %s1966_s1 = inlined_call_operand.vmem [shape: bf16[784,256], index: 1, kind: input, shape index: {}]   ;;  %s1967_s0 = inlined_call_operand.vmem [shape: f32[16,784], index: 0, kind: input, shape index: {}]   ;;  %s1968_s3 = inlined_call_operand.vmem [shape: bf16[256,128], index: 3, kind: input, shape index: {}]   ;;  %s1969_s5 = inlined_call_operand.vmem [shape: bf16[128,128], index: 5, kind: input, shape index: {}]   ;;  %s1970_s2 = inlined_call_operand.vmem [shape: f32[1,256], index: 2, kind: input, shape index: {}]   ;;  %s1971_s4 = inlined_call_operand.vmem [shape: f32[1,128], index: 4, kind: input, shape index: {}]   ;;  %s1972_s6 = inlined_call_operand.vmem [shape: f32[1,128], index: 6, kind: input, shape index: {}]   ;;  %s1973_s7 = inlined_call_operand.vmem [shape: bf16[16,128], index: 7, kind: output, shape index: {}]  }
   0x1   :  { %v1323_v0 = vld [vmem:[%s1966_s1 + $0x74] ss:$8 sps:$4 sm:$0xff]   ;;  %v1325_v1 = vld [vmem:[%s1966_s1 + $0x70] ss:$8 sps:$4 sm:$0xff]   ;;  %v1329_v4 = vld [vmem:[%s1966_s1 + $0x64] ss:$8 sps:$4 sm:$0xff]  }
   0x2   :  { %652 = vmatprep.subr.bf16.mxu0 %v1323_v0  ;;  %v1326_v2 = vld [vmem:[%s1966_s1 + $0x174] ss:$8 sps:$4 sm:$0xff]   ;;  %v1328_v3 = vld [vmem:[%s1966_s1 + $0x170] ss:$8 sps:$4 sm:$0xff]   ;;  %v1331_v5 = vld [vmem:[%s1966_s1 + $0x60] ss:$8 sps:$4 sm:$0xff]  }
   0x3   :  { %653 = vmatpush1.bf16.msra.mxu0 %v1325_v1  ;;  %695 = vmatprep.subr.bf16.mxu1 %v1326_v2  ;;  %v1332_v6 = vld [vmem:[%s1966_s1 + $0x164] ss:$8 sps:$4 sm:$0xff]   ;;  %v1334_v7 = vld [vmem:[%s1966_s1 + $0x160] ss:$8 sps:$4 sm:$0xff]   ;;  %v1335_v8 = vld [vmem:[%s1966_s1 + $0x54] ss:$8 sps:$4 sm:$0xff]  }
   0x4   :  { %696 = vmatpush1.bf16.msra.mxu1 %v1328_v3  ;;  %654 = vmatprep.subr.bf16.mxu0 %v1329_v4  ;;  %v1337_v9 = vld [vmem:[%s1966_s1 + $0x50] ss:$8 sps:$4 sm:$0xff]   ;;  %v1338_v10 = vld [vmem:[%s1966_s1 + $0x154] ss:$8 sps:$4 sm:$0xff]   ;;  %v1341_v11 = vld [vmem:[%s1966_s1 + $0x44] ss:$8 sps:$4 sm:$0xff]  }
   0x5   :  { %697 = vmatprep.subr.bf16.mxu1 %v1332_v6  ;;  %v1340_v12 = vld [vmem:[%s1966_s1 + $0x150] ss:$8 sps:$4 sm:$0xff]   ;;  %v1344_v13 = vld [vmem:[%s1966_s1 + $0x144] ss:$8 sps:$4 sm:$0xff]   ;;  %v1343_v14 = vld [vmem:[%s1966_s1 + $0x40] ss:$8 sps:$4 sm:$0xff]  }
   0x6   :  { %v1347_v15 = vld [vmem:[%s1966_s1 + $0x34] ss:$8 sps:$4 sm:$0xff]   ;;  %v1346_v16 = vld [vmem:[%s1966_s1 + $0x140] ss:$8 sps:$4 sm:$0xff]   ;;  %v1349_v18 = vld [vmem:[%s1966_s1 + $0x30] ss:$8 sps:$4 sm:$0xff]  }
   0x7   :  { %655 = vmatpush1.bf16.msra.mxu0 %v1331_v5  ;;  %v1350_v17 = vld [vmem:[%s1966_s1 + $0x134] ss:$8 sps:$4 sm:$0xff]   ;;  %v1353_v19 = vld [vmem:[%s1966_s1 + $0x24] ss:$8 sps:$4 sm:$0xff]   ;;  %v1352_v20 = vld [vmem:[%s1966_s1 + $0x130] ss:$8 sps:$4 sm:$0xff]  }
   0x8   :  { %656 = vmatprep.subr.bf16.mxu0 %v1335_v8  ;;  %698 = vmatpush1.bf16.msra.mxu1 %v1334_v7  ;;  %v1356_v21 = vld [vmem:[%s1966_s1 + $0x124] ss:$8 sps:$4 sm:$0xff]   ;;  %v1355_v22 = vld [vmem:[%s1966_s1 + $0x20] ss:$8 sps:$4 sm:$0xff]   ;;  %v1359_v23 = vld [vmem:[%s1966_s1 + $0x14] ss:$8 sps:$4 sm:$0xff]  }
   0x9   :  { %699 = vmatprep.subr.bf16.mxu1 %v1338_v10  ;;  %v1358_v24 = vld [vmem:[%s1966_s1 + $0x120] ss:$8 sps:$4 sm:$0xff]   ;;  %v1362_v25 = vld [vmem:[%s1966_s1 + $0x114] ss:$8 sps:$4 sm:$0xff]   ;;  %v1361_v26 = vld [vmem:[%s1966_s1 + $0x10] ss:$8 sps:$4 sm:$0xff]  }
   0xa   :  { %v1365_v27 = vld [vmem:[%s1966_s1 + $0x4] ss:$8 sps:$4 sm:$0xff]   ;;  %v1364_v28 = vld [vmem:[%s1966_s1 + $0x110] ss:$8 sps:$4 sm:$0xff]   ;;  %v1367_v30 = vld [vmem:[%s1966_s1] ss:$8 sps:$4 sm:$0xff]  }
   0xb   :  { %657 = vmatpush1.bf16.msra.mxu0 %v1337_v9  ;;  %v1368_v29 = vld [vmem:[%s1966_s1 + $0x104] ss:$8 sps:$4 sm:$0xff]   ;;  %v1371_v31 = vld [vmem:[%s1966_s1 + $0xf4] ss:$8 sps:$4 sm:$0xff]   ;;  %v1370_v32 = vld [vmem:[%s1966_s1 + $0x100] ss:$8 sps:$4 sm:$0xff]  }
   0xc   :  { %658 = vmatprep.subr.bf16.mxu0 %v1341_v11  ;;  %700 = vmatpush1.bf16.msra.mxu1 %v1340_v12  ;;  %v1374_v33 = vld [vmem:[%s1966_s1 + $0x1f4] ss:$8 sps:$4 sm:$0xff]   ;;  %v1373_v34 = vld [vmem:[%s1966_s1 + $0xf0] ss:$8 sps:$4 sm:$0xff]   ;;  %v1377_v35 = vld [vmem:[%s1966_s1 + $0xe4] ss:$8 sps:$4 sm:$0xff]  }
   0xd   :  { %701 = vmatprep.subr.bf16.mxu1 %v1344_v13  ;;  %v1376_v36 = vld [vmem:[%s1966_s1 + $0x1f0] ss:$8 sps:$4 sm:$0xff]   ;;  %v1380_v37 = vld [vmem:[%s1966_s1 + $0x1e4] ss:$8 sps:$4 sm:$0xff]   ;;  %v1379_v38 = vld [vmem:[%s1966_s1 + $0xe0] ss:$8 sps:$4 sm:$0xff]  }
   0xe   :  { %v1383_v39 = vld [vmem:[%s1966_s1 + $0xd4] ss:$8 sps:$4 sm:$0xff]   ;;  %v1382_v40 = vld [vmem:[%s1966_s1 + $0x1e0] ss:$8 sps:$4 sm:$0xff]   ;;  %v1385_v42 = vld [vmem:[%s1966_s1 + $0xd0] ss:$8 sps:$4 sm:$0xff]  }
   0xf   :  { %659 = vmatpush1.bf16.msra.mxu0 %v1343_v14  ;;  %v1386_v41 = vld [vmem:[%s1966_s1 + $0x1d4] ss:$8 sps:$4 sm:$0xff]   ;;  %v1389_v43 = vld [vmem:[%s1966_s1 + $0xc4] ss:$8 sps:$4 sm:$0xff]   ;;  %v1388_v44 = vld [vmem:[%s1966_s1 + $0x1d0] ss:$8 sps:$4 sm:$0xff]  }
  0x10   :  { %660 = vmatprep.subr.bf16.mxu0 %v1347_v15  ;;  %702 = vmatpush1.bf16.msra.mxu1 %v1346_v16  ;;  %v1392_v45 = vld [vmem:[%s1966_s1 + $0x1c4] ss:$8 sps:$4 sm:$0xff]   ;;  %v1391_v48 = vld [vmem:[%s1966_s1 + $0xc0] ss:$8 sps:$4 sm:$0xff]   ;;  %v1395_v50 = vld [vmem:[%s1966_s1 + $0xb4] ss:$8 sps:$4 sm:$0xff]  }
  0x11   :  { %703 = vmatprep.subr.bf16.mxu1 %v1350_v17  ;;  %v28_v46 = vld [vmem:[%s1967_s0 + $0x8] sm:$0xff]  ;;  %v35_v47 = vld [vmem:[%s1967_s0 + $0x40] sm:$0xff]  ;;  %v30_v52 = vld [vmem:[%s1967_s0 + $0x18] sm:$0xff] }
  0x12   :  { %v42_v49 = vpack.c.bf16 %v35_v47, %v28_v46  ;;  %v1394_v51 = vld [vmem:[%s1966_s1 + $0x1c0] ss:$8 sps:$4 sm:$0xff]   ;;  %v37_v53 = vld [vmem:[%s1967_s0 + $0x50] sm:$0xff]  ;;  %v1401_v57 = vld [vmem:[%s1966_s1 + $0xa4] ss:$8 sps:$4 sm:$0xff]  }
  0x13   :  { %661 = vmatpush1.bf16.msra.mxu0 %v1349_v18  ;;  %v1398_v54 = vld [vmem:[%s1966_s1 + $0x1b4] ss:$8 sps:$4 sm:$0xff]   ;;  %v44_v55 = vpack.c.bf16 %v37_v53, %v30_v52  ;;  %v1397_v56 = vld [vmem:[%s1966_s1 + $0xb0] ss:$8 sps:$4 sm:$0xff]   ;;  %v1404_v59 = vld [vmem:[%s1966_s1 + $0x1a4] ss:$8 sps:$4 sm:$0xff]  }
  0x14   :  { %662 = vmatprep.subr.bf16.mxu0 %v1353_v19  ;;  %704 = vmatpush1.bf16.msra.mxu1 %v1352_v20  ;;  %v1400_v58 = vld [vmem:[%s1966_s1 + $0x1b0] ss:$8 sps:$4 sm:$0xff]   ;;  %v1403_v60 = vld [vmem:[%s1966_s1 + $0xa0] ss:$8 sps:$4 sm:$0xff]   ;;  %v1407_v61 = vld [vmem:[%s1966_s1 + $0x94] ss:$8 sps:$4 sm:$0xff]  }
  0x15   :  { %705 = vmatprep.subr.bf16.mxu1 %v1356_v21  ;;  %684 = vmatprep.mubr.bf16.mxu0 %v42_v49  ;;  %v1406_v62 = vld [vmem:[%s1966_s1 + $0x1a0] ss:$8 sps:$4 sm:$0xff]   ;;  %v1410_v63 = vld [vmem:[%s1966_s1 + $0x194] ss:$8 sps:$4 sm:$0xff]   ;;  %v1409_v0 = vld [vmem:[%s1966_s1 + $0x90] ss:$8 sps:$4 sm:$0xff]  }
  0x16   :  { %727 = vmatprep.mubr.bf16.mxu1 %v44_v55  ;;  %v1412_v1 = vld [vmem:[%s1966_s1 + $0x190] ss:$8 sps:$4 sm:$0xff]   ;;  %v1413_v2 = vld [vmem:[%s1966_s1 + $0x84] ss:$8 sps:$4 sm:$0xff]   ;;  %v1415_v3 = vld [vmem:[%s1966_s1 + $0x80] ss:$8 sps:$4 sm:$0xff]  }
  0x17   :  { %663 = vmatpush1.bf16.msra.mxu0 %v1355_v22  ;;  %v1416_v4 = vld [vmem:[%s1966_s1 + $0x184] ss:$8 sps:$4 sm:$0xff]   ;;  %v1418_v6 = vld [vmem:[%s1966_s1 + $0x180] ss:$8 sps:$4 sm:$0xff]   ;;  %v34_v7 = vld [vmem:[%s1967_s0 + $0x38] sm:$0xff]  ;;  %v1494_v20 = vmov 0  }
  0x18   :  { %664 = vmatprep.subr.bf16.mxu0 %v1359_v23  ;;  %706 = vmatpush1.bf16.msra.mxu1 %v1358_v24  ;;  %v27_v5 = vld [vmem:[%s1967_s0] sm:$0xff]  ;;  %v1421_v8 = vld [vmem:[%s1966_s1 + $0x274] ss:$8 sps:$4 sm:$0xff]   ;;  %v36_v10 = vld [vmem:[%s1967_s0 + $0x48] sm:$0xff] }
  0x19   :  { %707 = vmatprep.subr.bf16.mxu1 %v1362_v25  ;;  %v29_v9 = vld [vmem:[%s1967_s0 + $0x10] sm:$0xff]  ;;  %v41_v11 = vpack.c.bf16 %v34_v7, %v27_v5  ;;  %v1424_v14 = vld [vmem:[%s1966_s1 + $0x264] ss:$8 sps:$4 sm:$0xff]   ;;  %v1464_v15 = vld [vmem:[%s1966_s1 + $0x300] ss:$8 sps:$4 sm:$0xff]  }
  0x1a   :  { %v1419_v12 = vld [vmem:[%s1966_s1 + $0x270] ss:$8 sps:$4 sm:$0xff]   ;;  %v43_v13 = vpack.c.bf16 %v36_v10, %v29_v9  ;;  %v1466_v16 = vld [vmem:[%s1966_s1 + $0x304] ss:$8 sps:$4 sm:$0xff]   ;;  %v1422_v17 = vld [vmem:[%s1966_s1 + $0x260] ss:$8 sps:$4 sm:$0xff]   ;;  %v148_v9 = vlaneseq }
  0x1b   :  { %665 = vmatpush1.bf16.msra.mxu0 %v1361_v26  ;;  %v1427_v18 = vld [vmem:[%s1966_s1 + $0x254] ss:$8 sps:$4 sm:$0xff]   ;;  %v32_v19 = vld [vmem:[%s1967_s0 + $0x28] sm:$0xff]  ;;  %v39_v23 = vld [vmem:[%s1967_s0 + $0x60] sm:$0xff] }
  0x1c   :  { %666 = vmatprep.subr.bf16.mxu0 %v1365_v27  ;;  %708 = vmatpush1.bf16.msra.mxu1 %v1364_v28  ;;  %v33_v21 = vld [vmem:[%s1967_s0 + $0x30] sm:$0xff]  ;;  %v40_v22 = vld [vmem:[%s1967_s0 + $0x68] sm:$0xff]  ;;  %v46_v24 = vpack.c.bf16 %v39_v23, %v32_v19  ;;  %v31_v53 = vld [vmem:[%s1967_s0 + $0x20] sm:$0xff] }
  0x1d   :  { %709 = vmatprep.subr.bf16.mxu1 %v1368_v29  ;;  %v1425_v25 = vld [vmem:[%s1966_s1 + $0x250] ss:$8 sps:$4 sm:$0xff]   ;;  %v1430_v26 = vld [vmem:[%s1966_s1 + $0x244] ss:$8 sps:$4 sm:$0xff]   ;;  %v47_v27 = vpack.c.bf16 %v40_v22, %v33_v21  ;;  %v1428_v28 = vld [vmem:[%s1966_s1 + $0x240] ss:$8 sps:$4 sm:$0xff]  }
  0x1e   :  { %v1433_v29 = vld [vmem:[%s1966_s1 + $0x234] ss:$8 sps:$4 sm:$0xff]   ;;  %v1455_v46 = vld [vmem:[%s1966_s1 + $0x2b0] ss:$8 sps:$4 sm:$0xff]   ;;  %v1460_v47 = vld [vmem:[%s1966_s1 + $0x2a4] ss:$8 sps:$4 sm:$0xff]  }
  0x1f   :  { %667 = vmatpush1.bf16.msra.mxu0 %v1367_v30  ;;  %v1431_v30 = vld [vmem:[%s1966_s1 + $0x230] ss:$8 sps:$4 sm:$0xff]   ;;  %v1463_v49 = vld [vmem:[%s1966_s1 + $0x294] ss:$8 sps:$4 sm:$0xff]   ;;  %v1467_v52 = vld [vmem:[%s1966_s1 + $0x280] ss:$8 sps:$4 sm:$0xff]  }
  0x20   :  { %668 = vmatprep.subr.bf16.mxu0 %v1371_v31  ;;  %710 = vmatpush1.bf16.msra.mxu1 %v1370_v32  ;;  %v1436_v31 = vld [vmem:[%s1966_s1 + $0x224] ss:$8 sps:$4 sm:$0xff]   ;;  %v1434_v32 = vld [vmem:[%s1966_s1 + $0x220] ss:$8 sps:$4 sm:$0xff]  }
  0x21   :  { %711 = vmatprep.subr.bf16.mxu1 %v1374_v33  ;;  %v1439_v33 = vld [vmem:[%s1966_s1 + $0x214] ss:$8 sps:$4 sm:$0xff]   ;;  %v1483_v5 = vld [vmem:[%s1968_s3 + $0x8] sm:$0xff]   ;;  %v1485_v7 = vld [vmem:[%s1968_s3] sm:$0xff]  }
  0x23   :  { %669 = vmatpush2.bf16.msra.mxu0 %v1373_v34  ;;  %v1437_v34 = vld [vmem:[%s1966_s1 + $0x210] ss:$8 sps:$4 sm:$0xff]  }
  0x24   :  { %670 = vmatprep.subr.bf16.mxu0 %v1377_v35  ;;  %712 = vmatpush2.bf16.msra.mxu1 %v1376_v36  ;;  %v1442_v35 = vld [vmem:[%s1966_s1 + $0x204] ss:$8 sps:$4 sm:$0xff]   ;;  %v1440_v36 = vld [vmem:[%s1966_s1 + $0x200] ss:$8 sps:$4 sm:$0xff]  }
  0x25   :  { %713 = vmatprep.subr.bf16.mxu1 %v1380_v37  ;;  %v1445_v37 = vld [vmem:[%s1966_s1 + $0x2f4] ss:$8 sps:$4 sm:$0xff]  }
  0x27   :  { %671 = vmatpush2.bf16.msra.mxu0 %v1379_v38  ;;  %v1443_v38 = vld [vmem:[%s1966_s1 + $0x2f0] ss:$8 sps:$4 sm:$0xff]  }
  0x28   :  { %672 = vmatprep.subr.bf16.mxu0 %v1383_v39  ;;  %714 = vmatpush2.bf16.msra.mxu1 %v1382_v40  ;;  %v1448_v39 = vld [vmem:[%s1966_s1 + $0x2e4] ss:$8 sps:$4 sm:$0xff]   ;;  %v1446_v40 = vld [vmem:[%s1966_s1 + $0x2e0] ss:$8 sps:$4 sm:$0xff]  }
  0x29   :  { %715 = vmatprep.subr.bf16.mxu1 %v1386_v41  ;;  %v1451_v41 = vld [vmem:[%s1966_s1 + $0x2d4] ss:$8 sps:$4 sm:$0xff]  }
  0x2b   :  { %673 = vmatpush2.bf16.msra.mxu0 %v1385_v42  ;;  %v1449_v42 = vld [vmem:[%s1966_s1 + $0x2d0] ss:$8 sps:$4 sm:$0xff]  }
  0x2c   :  { %674 = vmatprep.subr.bf16.mxu0 %v1389_v43  ;;  %716 = vmatpush2.bf16.msra.mxu1 %v1388_v44  ;;  %v1454_v43 = vld [vmem:[%s1966_s1 + $0x2c4] ss:$8 sps:$4 sm:$0xff]   ;;  %v1452_v44 = vld [vmem:[%s1966_s1 + $0x2c0] ss:$8 sps:$4 sm:$0xff]  }
  0x2d   :  { %717 = vmatprep.subr.bf16.mxu1 %v1392_v45  ;;  %v1457_v45 = vld [vmem:[%s1966_s1 + $0x2b4] ss:$8 sps:$4 sm:$0xff]  }
  0x2f   :  { %675 = vmatpush2.bf16.msra.mxu0 %v1391_v48  ;;  %v1458_v48 = vld [vmem:[%s1966_s1 + $0x2a0] ss:$8 sps:$4 sm:$0xff]  }
  0x30   :  { %676 = vmatprep.subr.bf16.mxu0 %v1395_v50  ;;  %718 = vmatpush2.bf16.msra.mxu1 %v1394_v51  ;;  %v1461_v50 = vld [vmem:[%s1966_s1 + $0x290] ss:$8 sps:$4 sm:$0xff]   ;;  %v1469_v51 = vld [vmem:[%s1966_s1 + $0x284] ss:$8 sps:$4 sm:$0xff]  }
  0x31   :  { %719 = vmatprep.subr.bf16.mxu1 %v1398_v54  ;;  %v38_v54 = vld [vmem:[%s1967_s0 + $0x58] sm:$0xff] }
  0x32   :  { %v45_v55 = vpack.c.bf16 %v38_v54, %v31_v53  ;;  %v1486_v53 = vld [vmem:[%s1969_s5 + $0x38] sm:$0xff]  }
  0x33   :  { %677 = vmatpush2.bf16.msra.mxu0 %v1397_v56  ;;  %v1470_v56 = vld [vmem:[%s1968_s3 + $0x78] sm:$0xff]  }
  0x34   :  { %678 = vmatprep.subr.bf16.mxu0 %v1401_v57  ;;  %720 = vmatpush2.bf16.msra.mxu1 %v1400_v58  ;;  %v1471_v57 = vld [vmem:[%s1968_s3 + $0x38] sm:$0xff]   ;;  %v1472_v58 = vld [vmem:[%s1968_s3 + $0x70] sm:$0xff]  }
  0x35   :  { %721 = vmatprep.subr.bf16.mxu1 %v1404_v59  ;;  %v1473_v59 = vld [vmem:[%s1968_s3 + $0x30] sm:$0xff]  }
  0x37   :  { %679 = vmatpush2.bf16.msra.mxu0 %v1403_v60  ;;  %v1474_v60 = vld [vmem:[%s1968_s3 + $0x68] sm:$0xff]  }
  0x38   :  { %680 = vmatprep.subr.bf16.mxu0 %v1407_v61  ;;  %722 = vmatpush2.bf16.msra.mxu1 %v1406_v62  ;;  %v1475_v61 = vld [vmem:[%s1968_s3 + $0x28] sm:$0xff]   ;;  %v1476_v62 = vld [vmem:[%s1968_s3 + $0x60] sm:$0xff]  }
  0x39   :  { %723 = vmatprep.subr.bf16.mxu1 %v1410_v63  ;;  %v1477_v63 = vld [vmem:[%s1968_s3 + $0x20] sm:$0xff]  }
  0x3b   :  { %681 = vmatpush2.bf16.msra.mxu0 %v1409_v0  ;;  %v1478_v0 = vld [vmem:[%s1968_s3 + $0x58] sm:$0xff]  }
  0x3c   :  { %682 = vmatprep.subr.bf16.mxu0 %v1413_v2  ;;  %724 = vmatpush2.bf16.msra.mxu1 %v1412_v1  ;;  %v1479_v1 = vld [vmem:[%s1968_s3 + $0x18] sm:$0xff]   ;;  %v1480_v2 = vld [vmem:[%s1968_s3 + $0x50] sm:$0xff]  }
  0x3d   :  { %725 = vmatprep.subr.bf16.mxu1 %v1416_v4  ;;  %v1482_v4 = vld [vmem:[%s1968_s3 + $0x48] sm:$0xff]  }
  0x3f   :  { %683 = vmatpush2.bf16.msra.mxu0 %v1415_v3  ;;  %v1481_v3 = vld [vmem:[%s1968_s3 + $0x10] sm:$0xff]  }
  0x40   :  { %738 = vmatprep.subr.bf16.mxu0 %v1421_v8  ;;  %726 = vmatpush2.bf16.msra.mxu1 %v1418_v6  ;;  %v1484_v6 = vld [vmem:[%s1968_s3 + $0x40] sm:$0xff]   ;;  %v1495_v8 = vmov 0.0  }
  0x41   :  { %795 = vmatprep.subr.bf16.mxu1 %v1466_v16 }
  0x42   :  { %685 = vmatmul.mubr.bf16.vlgmr.msra.gmra.mxu0 %v41_v11  ;;  %v149_v11 = vshrl.u32 %v148_v9, 7 }
  0x43   :  { %739 = vmatpush1.bf16.msra.mxu0 %v1419_v12  ;;  %728 = vmatmul.mubr.bf16.vlgmr.msra.gmra.mxu1 %v43_v13 }
  0x44   :  { %740 = vmatprep.subr.bf16.mxu0 %v1424_v14  ;;  %813 = vmatprep.mubr.bf16.mxu1 %v1494_v20  ;;  %v154_v14 = vsub.s32 1, %v149_v11  ;;  %v150_v16 = vsub.s32 0, %v149_v11 }
  0x45   :  { %796 = vmatpush1.bf16.msra.mxu1 %v1464_v15  ;;  %770 = vmatprep.mubr.bf16.mxu0 %v46_v24  ;;  %v146_v15 = vld [vmem:[%s1970_s2] sm:$0x3] }
  0x46   :  { %1269 = vmatprep.subr.bf16.mxu1 %v1470_v56  ;;  %v155_v19 = vrot.slane %v146_v15, %v154_v14  ;;  %v151_v20 = vrot.slane %v146_v15, %v150_v16  ;;  %v1488_v56 = vld [vmem:[%s1969_s5 + $0x28] sm:$0xff]  }
  0x47   :  { %741 = vmatpush1.bf16.msra.mxu0 %v1422_v17 }
  0x48   :  { %742 = vmatprep.subr.bf16.mxu0 %v1427_v18 }
  0x4b   :  { %743 = vmatpush1.bf16.msra.mxu0 %v1425_v25  ;;  %1233 = vmatmul.mubr.msk.bf16.vlgmr.msra.gmra.mxu1 %vm648_vm0, %v47_v27 }
  0x4c   :  { %744 = vmatprep.subr.bf16.mxu0 %v1430_v26  ;;  %1270 = vmatpush3.bf16.msra.mxu1 %v1471_v57  ;;  %v1489_v57 = vld [vmem:[%s1969_s5 + $0x20] sm:$0xff]  }
  0x4d   :  { %1271 = vmatprep.subr.bf16.mxu1 %v1472_v58  ;;  %v1490_v58 = vld [vmem:[%s1969_s5 + $0x18] sm:$0xff]  }
  0x4f   :  { %745 = vmatpush1.bf16.msra.mxu0 %v1428_v28 }
  0x50   :  { %746 = vmatprep.subr.bf16.mxu0 %v1433_v29  ;;  %1272 = vmatpush3.bf16.msra.mxu1 %v1473_v59  ;;  %v1491_v59 = vld [vmem:[%s1969_s5 + $0x10] sm:$0xff]  }
  0x51   :  { %1273 = vmatprep.subr.bf16.mxu1 %v1474_v60  ;;  %v1492_v60 = vld [vmem:[%s1969_s5 + $0x8] sm:$0xff]  }
  0x53   :  { %747 = vmatpush1.bf16.msra.mxu0 %v1431_v30 }
  0x54   :  { %748 = vmatprep.subr.bf16.mxu0 %v1436_v31  ;;  %1274 = vmatpush3.bf16.msra.mxu1 %v1475_v61  ;;  %v1493_v61 = vld [vmem:[%s1969_s5] sm:$0xff]  }
  0x55   :  { %1275 = vmatprep.subr.bf16.mxu1 %v1476_v62 }
  0x57   :  { %749 = vmatpush1.bf16.msra.mxu0 %v1434_v32 }
  0x58   :  { %750 = vmatprep.subr.bf16.mxu0 %v1439_v33  ;;  %1276 = vmatpush3.bf16.msra.mxu1 %v1477_v63 }
  0x59   :  { %1277 = vmatprep.subr.bf16.mxu1 %v1478_v0 }
  0x5b   :  { %751 = vmatpush1.bf16.msra.mxu0 %v1437_v34 }
  0x5c   :  { %752 = vmatprep.subr.bf16.mxu0 %v1442_v35  ;;  %1278 = vmatpush3.bf16.msra.mxu1 %v1479_v1  ;;  %v1234_v1 = vld [vmem:[%s1971_s4] ss:$0 sm:$0xff] }
  0x5d   :  { %1279 = vmatprep.subr.bf16.mxu1 %v1480_v2 }
  0x5f   :  { %753 = vmatpush1.bf16.msra.mxu0 %v1440_v36 }
  0x60   :  { %754 = vmatprep.subr.bf16.mxu0 %v1445_v37  ;;  %1280 = vmatpush3.bf16.msra.mxu1 %v1481_v3 }
  0x61   :  { %1281 = vmatprep.subr.bf16.mxu1 %v1482_v4 }
  0x63   :  { %755 = vmatpush2.bf16.msra.mxu0 %v1443_v38 }
  0x64   :  { %756 = vmatprep.subr.bf16.mxu0 %v1448_v39  ;;  %1282 = vmatpush3.bf16.msra.mxu1 %v1483_v5 }
  0x65   :  { %1283 = vmatprep.subr.bf16.mxu1 %v1484_v6 }
  0x67   :  { %757 = vmatpush2.bf16.msra.mxu0 %v1446_v40 }
  0x68   :  { %758 = vmatprep.subr.bf16.mxu0 %v1451_v41  ;;  %1284 = vmatpush3.bf16.msra.mxu1 %v1485_v7 }
  0x69   :  { %1300 = vmatprep.subr.bf16.mxu1 %v1495_v8 }
  0x6b   :  { %759 = vmatpush2.bf16.msra.mxu0 %v1449_v42 }
  0x6c   :  { %760 = vmatprep.subr.bf16.mxu0 %v1454_v43 }
  0x6f   :  { %761 = vmatpush2.bf16.msra.mxu0 %v1452_v44 }
  0x70   :  { %762 = vmatprep.subr.bf16.mxu0 %v1457_v45 }
  0x73   :  { %763 = vmatpush2.bf16.msra.mxu0 %v1455_v46 }
  0x74   :  { %764 = vmatprep.subr.bf16.mxu0 %v1460_v47 }
  0x77   :  { %765 = vmatpush2.bf16.msra.mxu0 %v1458_v48 }
  0x78   :  { %766 = vmatprep.subr.bf16.mxu0 %v1463_v49 }
  0x7b   :  { %767 = vmatpush2.bf16.msra.mxu0 %v1461_v50 }
  0x7c   :  { %768 = vmatprep.subr.bf16.mxu0 %v1469_v51 }
  0x7f   :  { %769 = vmatpush2.bf16.msra.mxu0 %v1467_v52 }
  0x82   :  { %771 = vmatmul.mubr.bf16.vlgmr.msra.gmra.mxu0 %v45_v55  ;;  %v1487_v55 = vld [vmem:[%s1969_s5 + $0x30] sm:$0xff]  }
 0x102   :  { %v686_v12 = vpop.f32.mrf.mxu0 }
 0x103   :  { %v729_v10 = vpop.f32.mrf.mxu1  ;;  %v687_v25 = vadd.f32 %v686_v12, %v151_v20 }
 0x104   :  { %v688_v17 = vpop.f32.mrf.mxu0 }
 0x105   :  { %v731_v13 = vpop.f32.mrf.mxu1  ;;  %v689_v24 = vadd.f32 %v688_v17, %v155_v19  ;;  %v730_v32 = vadd.f32 %v729_v10, %v687_v25 }
 0x106   :  { %v690_v21 = vpop.f32.mrf.mxu0 }
 0x107   :  { %v733_v18 = vpop.f32.mrf.mxu1  ;;  %v691_v27 = vadd.f32 %v690_v21, %v151_v20  ;;  %v732_v30 = vadd.f32 %v731_v13, %v689_v24 }
 0x108   :  { %v692_v26 = vpop.f32.mrf.mxu0 }
 0x109   :  { %v735_v22 = vpop.f32.mrf.mxu1  ;;  %v693_v31 = vadd.f32 %v692_v26, %v155_v19  ;;  %v734_v34 = vadd.f32 %v733_v18, %v691_v27 }
 0x10b   :  { %v815_v23 = vpop.f32.mrf.mxu1  ;;  %v736_v39 = vadd.f32 %v735_v22, %v693_v31 }
 0x10d   :  { %v817_v28 = vpop.f32.mrf.mxu1 }
 0x10f   :  { %v819_v37 = vpop.f32.mrf.mxu1 }
 0x111   :  { %v821_v46 = vpop.f32.mrf.mxu1 }
 0x142   :  { %v772_v29 = vpop.f32.mrf.mxu0 }
 0x143   :  { %v773_v36 = vadd.f32 %v772_v29, %v730_v32 }
 0x144   :  { %v774_v33 = vpop.f32.mrf.mxu0 }
 0x145   :  { %v775_v35 = vadd.f32 %v774_v33, %v732_v30  ;;  %v816_v45 = vadd.f32 %v815_v23, %v773_v36 }
 0x146   :  { %v776_v38 = vpop.f32.mrf.mxu0 }
 0x147   :  { %v777_v40 = vadd.f32 %v776_v38, %v734_v34  ;;  %v818_v42 = vadd.f32 %v817_v28, %v775_v35  ;;  %v824_v51 = vmax.f32 %v816_v45, 0.0 }
 0x148   :  { %v778_v41 = vpop.f32.mrf.mxu0 }
 0x149   :  { %v820_v43 = vadd.f32 %v819_v37, %v777_v40  ;;  %v779_v44 = vadd.f32 %v778_v41, %v736_v39  ;;  %v825_v49 = vmax.f32 %v818_v42, 0.0 }
 0x14b   :  { %v822_v47 = vadd.f32 %v821_v46, %v779_v44  ;;  %v826_v48 = vmax.f32 %v820_v43, 0.0 }
 0x14d   :  { %v827_v50 = vmax.f32 %v822_v47, 0.0  ;;  %v828_v54 = vpack.c.bf16 %v826_v48, %v824_v51 }
 0x14f   :  { %v829_v52 = vpack.c.bf16 %v827_v50, %v825_v49 }
 0x151   :  { %997 = vmatprep.mubr.bf16.mxu1 %v829_v52 }
 0x152   :  { %998 = vmatmul.mubr.bf16.vlgmr.msra.gmra.mxu1 %v828_v54 }
 0x153   :  { %1301 = vmatpush3.bf16.msra.mxu1 %v1486_v53  ;;  %1316 = vmatprep.mubr.msk.bf16.mxu1 %vm1496_vm1, %v1495_v8 }
 0x154   :  { %1302 = vmatprep.subr.bf16.mxu1 %v1495_v8 }
 0x157   :  { %1303 = vmatpush3.bf16.msra.mxu1 %v1487_v55 }
 0x158   :  { %1304 = vmatprep.subr.bf16.mxu1 %v1495_v8 }
 0x15b   :  { %1305 = vmatpush3.bf16.msra.mxu1 %v1488_v56 }
 0x15c   :  { %1306 = vmatprep.subr.bf16.mxu1 %v1495_v8 }
 0x15f   :  { %1307 = vmatpush3.bf16.msra.mxu1 %v1489_v57 }
 0x160   :  { %1308 = vmatprep.subr.bf16.mxu1 %v1495_v8 }
 0x163   :  { %1309 = vmatpush3.bf16.msra.mxu1 %v1490_v58 }
 0x164   :  { %1310 = vmatprep.subr.bf16.mxu1 %v1495_v8 }
 0x167   :  { %1311 = vmatpush3.bf16.msra.mxu1 %v1491_v59 }
 0x168   :  { %1312 = vmatprep.subr.bf16.mxu1 %v1495_v8 }
 0x16b   :  { %1313 = vmatpush3.bf16.msra.mxu1 %v1492_v60 }
 0x16c   :  { %1314 = vmatprep.subr.bf16.mxu1 %v1495_v8  ;;  %v1251_v8 = vld [vmem:[%s1972_s6] ss:$0 sm:$0xff] }
 0x16f   :  { %1315 = vmatpush3.bf16.msra.mxu1 %v1493_v61 }
 0x212   :  { %v1285_v62 = vpop.f32.mrf.mxu1 }
 0x214   :  { %v1286_v63 = vpop.f32.mrf.mxu1 }
 0x215   :  { %v1287_v0 = vadd.f32 %v1286_v63, %v1285_v62 }
 0x216   :  { %v1288_v2 = vpop.f32.mrf.mxu1 }
 0x217   :  { %v1000_v4 = vadd.f32 %v1287_v0, %v1234_v1 }
 0x218   :  { %v1289_v3 = vpop.f32.mrf.mxu1 }
 0x219   :  { %v1290_v5 = vadd.f32 %v1289_v3, %v1288_v2  ;;  %v1006_v7 = vmax.f32 %v1000_v4, 0.0 }
 0x21b   :  { %v1003_v6 = vadd.f32 %v1290_v5, %v1234_v1 }
 0x21d   :  { %v1007_v9 = vmax.f32 %v1003_v6, 0.0 }
 0x21f   :  { %v1008_v10 = vpack.c.bf16 %v1007_v9, %v1006_v7 }
 0x221   :  { %1317 = vmatmul.mubr.bf16.vlgmr.msra.gmra.mxu1 %v1008_v10 }
 0x2e1   :  { %v1114_v11 = vpop.f32.mrf.mxu1 }
 0x2e2   :  { %v1115_v14 = vadd.f32 %v1251_v8, %v1114_v11 }
 0x2e3   :  { %v1318_v12 = vpop.f32.mrf.mxu1 }
 0x2e5   :  { %v1117_v13 = vpop.f32.mrf.mxu1 }
 0x2e6   :  { %v1118_v15 = vadd.f32 %v1251_v8, %v1117_v13 }
 0x2e7   :  { %v1319_v16 = vpop.f32.mrf.mxu1 }
 0x2e8   :  { %v1267_v17 = vpack.c.bf16 %v1118_v15, %v1115_v14 }
 0x2ea   :  { %1268 = vst [vmem:[%s1973_s7] sm:$0xff] %v1267_v17  }

</bundles_post_ra>
